<compile_context>
chip_gen: v7x
topology: tpu7x:2x2x1
jax: 0.10.0
libtpu: 0.0.40
codegen_flags: <defaults>
</compile_context>

<pallas_src>
import functools

import jax
import jax.numpy as jnp
from jax.experimental import pallas as pl
from jax.experimental.pallas import tpu as pltpu

INPUT_SIZE = 17
HIDDEN_SIZE = 8

_LANE = 128
_MAX_BLOCK_B = 16384  # lane-padded x double-buffer: 2 * tb * 128 * 4 B <= 16 MiB

# dot_general dimension numbers for A @ B^T (contract the last dim of both).
_TRANS_B_DIMS = (((1,), (1,)), ((), ()))


def mlp_kernel(x_ref, w1_ref, b1_ref, w2_ref, b2_ref, o_ref):
    """One batch tile.

    x_ref:  (TB, F)  input rows (natural layout, features on lanes)
    w1_ref: (H, F)   fc1.weight (PyTorch layout), resident in VMEM
    b1_ref: (H, 1)   fc1.bias as a column, resident in VMEM
    w2_ref: (H, 1)   fc2.weight as a column, resident in VMEM
    b2_ref: (1, 1)   fc2.bias scalar in SMEM
    o_ref:  (1, TB)  lane-dense output row
    """
    x = x_ref[...]
    w1 = w1_ref[...]
    b2 = b2_ref[0, 0]

    # fc1, emitted transposed so batch maps to lanes:
    #   h_t[h, b] = sum_f w1[h, f] * x[b, f]
    h_t = jax.lax.dot_general(
        w1, x,
        dimension_numbers=_TRANS_B_DIMS,
        preferred_element_type=jnp.float32,
    )                                             # (H, TB), f32 accumulate
    h_t = jnp.maximum(h_t + b1_ref[...], 0.0)     # bias bcast over lanes + ReLU

    # fc2 on the VPU/XLU: weighted sum over the H sublanes -> (1, TB).
    y = jnp.sum(h_t * w2_ref[...], axis=0, keepdims=True)
    y = jax.nn.sigmoid(y + b2)                    # scalar bias from SMEM

    o_ref[...] = y.astype(o_ref.dtype)


def _round_up(n, m):
    return -(-n // m) * m


def _cdiv(a, b):
    return -(-a // b)


@functools.partial(jax.jit, static_argnames=("block_b", "min_tiles"))
def mlp_forward(x, w1, b1, w2, b2, *, block_b=8192, min_tiles=2):
    """x: [B, F]; w1: [H, F]; b1: [H]; w2: [1, H]; b2: [1]  ->  [B, 1]."""
    B, F = x.shape
    H = w1.shape[0]

    # Tile target: multiple of 128 (lane width), capped for VMEM headroom.
    block_b = _round_up(max(_LANE, min(block_b, _MAX_BLOCK_B)), _LANE)

    # Even batch tiling: no huge mostly-padding tail tile, and at least
    # `min_tiles` grid steps when the batch allows it (v7x megacore sharding).
    b128 = _round_up(max(B, 1), _LANE)
    n_tiles = _cdiv(b128, block_b)
    if n_tiles < min_tiles:
        n_tiles = max(1, min(min_tiles, b128 // _LANE))
    tb = _round_up(_cdiv(b128, n_tiles), _LANE)
    b_pad = n_tiles * tb

    if b_pad != B:
        x = jnp.pad(x, ((0, b_pad - B), (0, 0)))   # zero rows -> finite outputs

    w1 = w1.astype(x.dtype)
    b1c = b1.reshape(H, 1).astype(jnp.float32)
    w2c = w2.reshape(H, 1).astype(jnp.float32)
    b2c = b2.reshape(1, 1).astype(jnp.float32)

    itemsize = jnp.dtype(x.dtype).itemsize
    cost = pl.CostEstimate(
        flops=2 * b_pad * (F * H + H),
        transcendentals=b_pad,                       # one exp per row (sigmoid)
        bytes_accessed=b_pad * F * itemsize + b_pad * 4 + (H * F + 2 * H + 1) * 4,
    )

    out = pl.pallas_call(
        mlp_kernel,
        out_shape=jax.ShapeDtypeStruct((1, b_pad), jnp.float32),
        grid=(n_tiles,),
        in_specs=[
            pl.BlockSpec((tb, F), lambda i: (i, 0)),            # x tile (streamed)
            pl.BlockSpec((H, F), lambda i: (0, 0)),             # w1 (resident)
            pl.BlockSpec((H, 1), lambda i: (0, 0)),             # b1 (resident)
            pl.BlockSpec((H, 1), lambda i: (0, 0)),             # w2 (resident)
            pl.BlockSpec(memory_space=pltpu.MemorySpace.SMEM),  # b2 scalar
        ],
        out_specs=pl.BlockSpec((1, tb), lambda i: (0, i)),
        compiler_params=pltpu.CompilerParams(
            dimension_semantics=("parallel",),
            vmem_limit_bytes=32 * 1024 * 1024,
        ),
        cost_estimate=cost,
    )(x, w1, b1c, w2c, b2c)

    # (1, b_pad) row-major == (b_pad, 1): reshape is free; drop padded rows.
    return out.reshape(b_pad, 1)[:B]


def init_params(key, input_size=INPUT_SIZE, hidden_size=HIDDEN_SIZE):
    """nn.Linear-style uniform init, PyTorch parameter layouts."""
    k1, k2, k3, k4 = jax.random.split(key, 4)
    lim1 = float(input_size) ** -0.5
    lim2 = float(hidden_size) ** -0.5
    w1 = jax.random.uniform(k1, (hidden_size, input_size), jnp.float32, -lim1, lim1)
    b1 = jax.random.uniform(k2, (hidden_size,), jnp.float32, -lim1, lim1)
    w2 = jax.random.uniform(k3, (1, hidden_size), jnp.float32, -lim2, lim2)
    b2 = jax.random.uniform(k4, (1,), jnp.float32, -lim2, lim2)
    return w1, b1, w2, b2


def _ref(x, w1, b1, w2, b2):
    # Pure-JAX reference with PyTorch semantics:
    #   sigmoid(relu(x @ W1^T + b1) @ W2^T + b2)
    return jax.nn.sigmoid(jnp.maximum(x @ w1.T + b1, 0.0) @ w2.T + b2)


if __name__ == "__main__":
    key = jax.random.PRNGKey(0)
    k_x, k_x2, k_p = jax.random.split(key, 3)
    w1, b1, w2, b2 = init_params(k_p)

    # Small single-tile case.
    batch = 8
    x = jax.random.normal(k_x, (batch, INPUT_SIZE), jnp.float32)
    y = mlp_forward(x, w1, b1, w2, b2)
    jax.block_until_ready(y)
    ref = _ref(x, w1, b1, w2, b2)
    assert y.shape == (batch, 1)
    # Tolerance covers MXU default-precision matmul vs. the XLA reference path.
    assert jnp.allclose(y, ref, atol=2e-3, rtol=0.0), (
        f"max abs err = {float(jnp.max(jnp.abs(y - ref)))}"
    )

    # Multi-tile case (exercises even tail tiling, padding and tile stitching).
    batch2 = 300
    x2 = jax.random.normal(k_x2, (batch2, INPUT_SIZE), jnp.float32)
    y2 = mlp_forward(x2, w1, b1, w2, b2, block_b=128)
    jax.block_until_ready(y2)
    ref2 = _ref(x2, w1, b1, w2, b2)
    assert y2.shape == (batch2, 1)
    assert jnp.allclose(y2, ref2, atol=2e-3, rtol=0.0), (
        f"max abs err = {float(jnp.max(jnp.abs(y2 - ref2)))}"
    )

    print("KERNEL_OK")
</pallas_src>

<mosaic_0001>
module attributes {stable_mosaic.version = 11 : i64} {
  func.func @mlp_kernel(%arg0: i32, %arg1: memref<128x17xf32, #tpu.memory_space<vmem>>, %arg2: memref<8x17xf32, #tpu.memory_space<vmem>>, %arg3: memref<8x1xf32, #tpu.memory_space<vmem>>, %arg4: memref<8x1xf32, #tpu.memory_space<vmem>>, %arg5: memref<1x1xf32, #tpu.memory_space<smem>>, %arg6: memref<1x128xf32, #tpu.memory_space<vmem>>) attributes {dimension_semantics = [#tpu.dimension_semantics<parallel>], iteration_bounds = array<i64: 1>, scalar_prefetch = 0 : i64, scratch_operands = 0 : i64, tpu.core_type = #tpu.core_type<tc>, window_params = [{transform_indices = @transform_0, window_bounds = array<i64: 128, 17>}, {pipeline_mode = #tpu.pipeline_mode<synchronous>, transform_indices = @transform_1, window_bounds = array<i64: 8, 17>}, {pipeline_mode = #tpu.pipeline_mode<synchronous>, transform_indices = @transform_2, window_bounds = array<i64: 8, 1>}, {pipeline_mode = #tpu.pipeline_mode<synchronous>, transform_indices = @transform_3, window_bounds = array<i64: 8, 1>}, {transform_indices = @transform_4, window_bounds = array<i64: 1, 1>}, {transform_indices = @transform_5, window_bounds = array<i64: 1, 128>}]} {
    %c0 = arith.constant 0 : index
    %c0_0 = arith.constant 0 : index
    %0 = vector.load %arg1[%c0, %c0_0] : memref<128x17xf32, #tpu.memory_space<vmem>>, vector<128x17xf32>
    %c0_1 = arith.constant 0 : index
    %c0_2 = arith.constant 0 : index
    %1 = vector.load %arg2[%c0_1, %c0_2] : memref<8x17xf32, #tpu.memory_space<vmem>>, vector<8x17xf32>
    %c0_3 = arith.constant 0 : index
    %c0_4 = arith.constant 0 : index
    %2 = memref.load %arg5[%c0_3, %c0_4] : memref<1x1xf32, #tpu.memory_space<smem>>
    %cst = arith.constant dense<0.000000e+00> : vector<8x128xf32>
    %3 = tpu.matmul %1, %0, %cst {dimension_numbers = #tpu.dot_dimension_numbers<[1], [1], [0], [0], [0, 0, 1, 0], [], []>} : vector<8x17xf32>, vector<128x17xf32>, vector<8x128xf32> -> vector<8x128xf32>
    %c0_5 = arith.constant 0 : index
    %c0_6 = arith.constant 0 : index
    %4 = vector.load %arg3[%c0_5, %c0_6] : memref<8x1xf32, #tpu.memory_space<vmem>>, vector<8x1xf32>
    %5 = vector.broadcast %4 : vector<8x1xf32> to vector<8x128xf32>
    %6 = arith.addf %3, %5 : vector<8x128xf32>
    %cst_7 = arith.constant 0.000000e+00 : f32
    %7 = vector.broadcast %cst_7 : f32 to vector<8x128xf32>
    %8 = arith.maximumf %6, %7 : vector<8x128xf32>
    %c0_8 = arith.constant 0 : index
    %c0_9 = arith.constant 0 : index
    %9 = vector.load %arg4[%c0_8, %c0_9] : memref<8x1xf32, #tpu.memory_space<vmem>>, vector<8x1xf32>
    %10 = vector.broadcast %9 : vector<8x1xf32> to vector<8x128xf32>
    %11 = arith.mulf %8, %10 : vector<8x128xf32>
    %cst_10 = arith.constant dense<0.000000e+00> : vector<128xf32>
    %12 = vector.multi_reduction <add>, %11, %cst_10 [0] : vector<8x128xf32> to vector<128xf32>
    %13 = vector.shape_cast %12 : vector<128xf32> to vector<1x128xf32>
    %14 = vector.broadcast %2 : f32 to vector<1x128xf32>
    %15 = arith.addf %13, %14 : vector<1x128xf32>
    %16 = arith.negf %15 : vector<1x128xf32>
    %17 = math.exp %16 : vector<1x128xf32>
    %cst_11 = arith.constant 1.000000e+00 : f32
    %18 = vector.broadcast %cst_11 : f32 to vector<1x128xf32>
    %19 = arith.addf %18, %17 : vector<1x128xf32>
    %20 = arith.divf %18, %19 : vector<1x128xf32>
    %c0_12 = arith.constant 0 : index
    %c0_13 = arith.constant 0 : index
    %21 = vector.load %arg6[%c0_12, %c0_13] : memref<1x128xf32, #tpu.memory_space<vmem>>, vector<1x128xf32>
    tpu.vector_store %arg6[%c0_12, %c0_13], %20 {strides = array<i32>} : memref<1x128xf32, #tpu.memory_space<vmem>>, vector<1x128xf32>,
    return
  }
  func.func @transform_0(%arg0: i32) -> (i32, i32) {
    %c0_i32 = arith.constant 0 : i32
    %c0_i32_0 = arith.constant 0 : i32
    return %arg0, %c0_i32 : i32, i32
  }
  func.func @transform_1(%arg0: i32) -> (i32, i32) {
    %c0_i32 = arith.constant 0 : i32
    %c0_i32_0 = arith.constant 0 : i32
    %c0_i32_1 = arith.constant 0 : i32
    return %c0_i32, %c0_i32_0 : i32, i32
  }
  func.func @transform_2(%arg0: i32) -> (i32, i32) {
    %c0_i32 = arith.constant 0 : i32
    %c0_i32_0 = arith.constant 0 : i32
    %c0_i32_1 = arith.constant 0 : i32
    return %c0_i32, %c0_i32_0 : i32, i32
  }
  func.func @transform_3(%arg0: i32) -> (i32, i32) {
    %c0_i32 = arith.constant 0 : i32
    %c0_i32_0 = arith.constant 0 : i32
    %c0_i32_1 = arith.constant 0 : i32
    return %c0_i32, %c0_i32_0 : i32, i32
  }
  func.func @transform_4(%arg0: i32) -> (i32, i32) {
    %c0_i32 = arith.constant 0 : i32
    %c0_i32_0 = arith.constant 0 : i32
    %c0_i32_1 = arith.constant 0 : i32
    return %c0_i32, %c0_i32_0 : i32, i32
  }
  func.func @transform_5(%arg0: i32) -> (i32, i32) {
    %c0_i32 = arith.constant 0 : i32
    %c0_i32_0 = arith.constant 0 : i32
    return %c0_i32, %arg0 : i32, i32
  }
}

</mosaic_0001>

<bundles_post_ra>
// kernel: mlp_forward.1
= control target key start
LH: loop header
LB: loop body
LE: loop exit
PB: predicated region body
PF: predicated region fallthrough
CT: control target
= control target key end

     0   :  { %vm45_vm0 = vcmask 138240   ;;  %v305_v0 = vmov 0.0|0.0   ;;  %vm306_vm2 = vmmov 0   ;;  %v307_v4 = vmov 0.0   ;;  %s425_s0 = inlined_call_operand.vmem [shape: f32[128,17], index: 0, kind: input, shape index: {}]   ;;  %s426_s2 = inlined_call_operand.vmem [shape: f32[8,1], index: 2, kind: input, shape index: {}]   ;;  %s427_s3 = inlined_call_operand.vmem [shape: f32[8,1], index: 3, kind: input, shape index: {}]   ;;  %s428_s1 = inlined_call_operand.vmem [shape: f32[8,17], index: 1, kind: input, shape index: {}]   ;;  %s429_s4 = inlined_call_operand.<no memory space> [shape: f32[1,1], index: 4, kind: input, shape index: {}]   ;;  %s430_s5 = inlined_call_operand.vmem [shape: f32[1,128], index: 5, kind: output, shape index: {}]  }
   0x1   :  { %264 = vmatprep.subr.bf16.mxu0 %v305_v0  ;;  %v21_v1 = vld [vmem:[%s425_s0] sm:$0xff]  ;;  %v22_v2 = vld [vmem:[%s425_s0 + $0x8] sm:$0xff]  ;;  %vm347_vm1 = vmpackc.low %vm45_vm0, %vm45_vm0  ;;  %261 = vmatprep.mubr.msk.f32.mxu0 %vm306_vm2, %v307_v4  ;;  %v308_v6 = vmov 0   ;;  %v181_v43 = vstv %s429_s4 }
   0x2   :  { %v265_v5 = vpack.c.bf16 %v22_v2, %v21_v1  ;;  %300 = vset.pattern.permute.xlu0 %v308_v6  ;;  %v23_v7 = vld [vmem:[%s425_s0 + $0x10] sm:$0xff]  ;;  %v24_v8 = vld [vmem:[%s425_s0 + $0x18] sm:$0xff]  ;;  %v39_v9 = vld [vmem:[%s426_s2] sm:$0xff] }
   0x3   :  { %v269_v10 = vpack.c.bf16 %v24_v8, %v23_v7  ;;  %42 = vperm.xlu0 %300, %v39_v9   ;;  %v168_v11 = vld [vmem:[%s427_s3] sm:$0xff]  ;;  %v26_v13 = vld [vmem:[%s425_s0 + $0x28] sm:$0xff]  ;;  %v27_v15 = vld [vmem:[%s425_s0 + $0x30] sm:$0xff] }
   0x4   :  { %267 = vmatpush3.bf16.xpose.msk.msra.mxu0 %vm347_vm1, %v265_v5  ;;  %v25_v12 = vld [vmem:[%s425_s0 + $0x20] sm:$0xff]  ;;  %v28_v16 = vld [vmem:[%s425_s0 + $0x38] sm:$0xff]  ;;  %v30_v19 = vld [vmem:[%s425_s0 + $0x48] sm:$0xff] }
   0x5   :  { %268 = vmatprep.subr.bf16.mxu0 %v305_v0  ;;  %v273_v14 = vpack.c.bf16 %v26_v13, %v25_v12  ;;  %v277_v17 = vpack.c.bf16 %v28_v16, %v27_v15  ;;  %v29_v18 = vld [vmem:[%s425_s0 + $0x40] sm:$0xff]  ;;  %v31_v21 = vld [vmem:[%s425_s0 + $0x50] sm:$0xff]  ;;  %v32_v22 = vld [vmem:[%s425_s0 + $0x58] sm:$0xff] }
   0x6   :  { %v281_v20 = vpack.c.bf16 %v30_v19, %v29_v18  ;;  %v285_v23 = vpack.c.bf16 %v32_v22, %v31_v21  ;;  %v33_v24 = vld [vmem:[%s425_s0 + $0x60] sm:$0xff]  ;;  %v34_v25 = vld [vmem:[%s425_s0 + $0x68] sm:$0xff]  ;;  %v35_v27 = vld [vmem:[%s425_s0 + $0x70] sm:$0xff] }
   0x7   :  { %171 = vperm.xlu0 %300, %v168_v11   ;;  %v289_v26 = vpack.c.bf16 %v34_v25, %v33_v24  ;;  %v36_v28 = vld [vmem:[%s425_s0 + $0x78] sm:$0xff]  ;;  %v37_v30 = vld [vmem:[%s428_s1] sm:$0xff] }
   0x8   :  { %v293_v29 = vpack.c.bf16 %v36_v28, %v35_v27 }
   0xc   :  { %271 = vmatpush3.bf16.xpose.msk.msra.mxu0 %vm347_vm1, %v269_v10 }
   0xd   :  { %272 = vmatprep.subr.bf16.mxu0 %v305_v0 }
  0x14   :  { %275 = vmatpush3.bf16.xpose.msk.msra.mxu0 %vm347_vm1, %v273_v14 }
  0x15   :  { %276 = vmatprep.subr.bf16.mxu0 %v305_v0 }
  0x1c   :  { %279 = vmatpush3.bf16.xpose.msk.msra.mxu0 %vm347_vm1, %v277_v17 }
  0x1d   :  { %280 = vmatprep.subr.bf16.mxu0 %v305_v0 }
  0x24   :  { %283 = vmatpush3.bf16.xpose.msk.msra.mxu0 %vm347_vm1, %v281_v20 }
  0x25   :  { %284 = vmatprep.subr.bf16.mxu0 %v305_v0 }
  0x2c   :  { %287 = vmatpush3.bf16.xpose.msk.msra.mxu0 %vm347_vm1, %v285_v23 }
  0x2d   :  { %288 = vmatprep.subr.bf16.mxu0 %v305_v0 }
  0x34   :  { %291 = vmatpush3.bf16.xpose.msk.msra.mxu0 %vm347_vm1, %v289_v26 }
  0x35   :  { %292 = vmatprep.subr.bf16.mxu0 %v305_v0 }
  0x3c   :  { %295 = vmatpush3.bf16.xpose.msk.msra.mxu0 %vm347_vm1, %v293_v29 }
  0x43   :  { %262 = vmatmul.mubr.msk.f32.vlgmr.msra.gmra.mrb[0].mxu0 %vm45_vm0, %v37_v30 }
  0x82   :  { %v43_v31 = vpop.permute.xlu0 %42 }
  0x86   :  { %v172_v36 = vpop.permute.xlu0 %171 }
 0x116   :  { %v163_v32 = vpop.f32.mrb[0].mxu0 }
 0x117   :  { %v164_v33 = vadd.f32 %v163_v32, %v43_v31  ;;  %v263_v34 = vpop.f32.mrb[1].mxu0 }
 0x119   :  { %v167_v35 = vmax.f32 %v164_v33, 0.0 }
 0x11b   :  { %v174_v37 = vmul.f32 %v172_v36, %v167_v35 }
 0x11d   :  { %v175_v38 = vrot.slane %v174_v37, 4 }
 0x11f   :  { %v176_v39 = vadd.f32 %v175_v38, %v174_v37 }
 0x121   :  { %v177_v40 = vrot.slane %v176_v39, 2 }
 0x123   :  { %v178_v41 = vadd.f32 %v177_v40, %v176_v39 }
 0x125   :  { %v179_v42 = vrot.slane %v178_v41, 1 }
 0x127   :  { %v180_v44 = vadd.f32 %v179_v42, %v178_v41 }
 0x129   :  { %v182_v45 = vadd.f32 %v181_v43, %v180_v44 }
 0x12b   :  { %v211_v46 = vmul.f32 -1.442695, %v182_v45 }
 0x12d   :  { %301 = vpow2.f32 %v211_v46 }
 0x137   :  { %v302_v47 = vpop.eup %301 }
 0x138   :  { %v186_v48 = vadd.f32 1.0, %v302_v47 }
 0x13a   :  { %303 = vrcp.f32 %v186_v48 }
 0x144   :  { %v304_v49 = vpop.eup %303 }
 0x145   :  { %189 = vst [vmem:[%s430_s5] sm:$0x1] %v304_v49 }

</bundles_post_ra>
